<compile_context>
chip_gen: v7x
topology: tpu7x:2x2x1
jax: 0.10.0
libtpu: 0.0.40
codegen_flags: <defaults>
</compile_context>

<pallas_src>
import functools
import math

import jax
import jax.numpy as jnp
from jax.experimental import pallas as pl
from jax.experimental.pallas import tpu as pltpu


def _round_up(a, b):
    return -(-a // b) * b


def _choose_pack(features):
    """Coordinates packed per kernel row so the output lane dim P*F is 128-dense."""
    for target in (256, 128):                       # prefer 256: fills v6e/v7x MXU width
        if target % features == 0:
            return target // features
    if features % 128 == 0:                         # already lane-dense
        return 1
    p = 128 // math.gcd(features, 128)              # lcm(F, 128) // F
    if p * features <= 2048:                        # keep lane tiles reasonable (F=48/96/192...)
        return p
    return 1                                        # fallback: masked stores, still correct


def _sin_bounded(x):
    """sin(x) for moderately bounded |x| (here |x| <= sum|w'| + |b'|, a few units).

    One-step Cody-Waite reduction to [-pi/2, pi/2] plus an odd Taylor-13 polynomial
    (truncation < 1e-9; total f32 error ~1e-6).  Much cheaper on the VPU than the
    generic full-range sin expansion.
    """
    inv_pi = 0.3183098861837907
    pi_hi = 3.140625                    # 8 mantissa bits -> k*pi_hi exact in f32
    pi_lo = 9.676535897932e-4           # pi - pi_hi
    k = jnp.round(x * inv_pi)
    r = (x - k * pi_hi) - k * pi_lo
    sign = 1.0 - 2.0 * (k - 2.0 * jnp.floor(0.5 * k))       # (-1)^k
    r2 = r * r
    p = 1.0 / 6227020800.0
    p = p * r2 - 1.0 / 39916800.0
    p = p * r2 + 1.0 / 362880.0
    p = p * r2 - 1.0 / 5040.0
    p = p * r2 + 1.0 / 120.0
    p = p * r2 - 1.0 / 6.0
    p = p * r2 + 1.0
    return sign * (r * p)


def _fourier_kernel(x_ref, y_ref, w_ref, b_ref, o_ref, z_ref, *, use_fast_sin):
    # x_ref/y_ref: (tm, P) packed coordinate blocks (streamed)
    # w_ref:       (2P, lanes) block-diagonal folded weights (resident)
    # b_ref:       (1, lanes) folded bias row (resident)
    # o_ref:       (tm, lanes) lane-dense output
    # z_ref:       (tm, 2P) VMEM scratch for the assembled LHS
    p = x_ref.shape[1]
    # Assemble LHS in VMEM with two cheap sub-lane stores, then ONE dot (keeping a single
    # dot halves MXU pushes vs x@Wx + y@Wy).
    z_ref[:, :p] = x_ref[...]
    z_ref[:, p:] = y_ref[...]
    proj = jnp.dot(z_ref[...], w_ref[...],
                   preferred_element_type=jnp.float32) + b_ref[...]
    s = _sin_bounded(proj) if use_fast_sin else jnp.sin(proj)
    o_ref[...] = s.astype(o_ref.dtype)


def fourier_embedding(y, x, weight, bias, height, width, *,
                      block_rows=2048, out_dtype=jnp.float32, use_fast_sin=True):
    """y, x: (B, N) pixel coords; weight: (F, 2) [PyTorch nn.Linear layout]; bias: (F,).

    Returns sin(Linear(2, F)([x_norm, y_norm])) with shape (B, N, F).
    out_dtype=jnp.bfloat16 halves writeback traffic (recommended on v5e) but changes
    numerics vs the f32 PyTorch reference.
    NOTE: width == 1 or height == 1 divides by zero (same hazard as the reference module).
    """
    B, N = x.shape
    F = weight.shape[0]
    M = B * N

    P = _choose_pack(F)
    lanes = P * F
    K = 2 * P

    # Fold the coordinate normalization into the Linear weights (algebraically exact):
    #   x_norm*W[:,0] + y_norm*W[:,1] + b == x*w0' + y*w1' + b'
    w = weight.astype(jnp.float32)
    b = bias.astype(jnp.float32)
    w0 = (2.0 / (width - 1.0)) * w[:, 0]
    w1 = (2.0 / (height - 1.0)) * w[:, 1]
    bf = b - w[:, 0] - w[:, 1]

    # Block-diagonal folded weights: pack position p uses lanes [p*F, (p+1)*F).
    eye = jnp.eye(P, dtype=jnp.float32)
    w_full = jnp.concatenate([jnp.kron(eye, w0[None, :]),
                              jnp.kron(eye, w1[None, :])], axis=0)    # (2P, lanes)
    b_row = jnp.tile(bf, P)[None, :]                                  # (1, lanes)

    # Packed coordinate rows, padded only to a sublane multiple (ragged grid handles the
    # last block; no pad-to-tile-multiple and no full-output slice copy for aligned M).
    Mp = -(-M // P)
    Mp_pad = _round_up(Mp, 8)
    M_pad = Mp_pad * P
    x_p = jnp.pad(x.reshape(M).astype(jnp.float32), (0, M_pad - M)).reshape(Mp_pad, P)
    y_p = jnp.pad(y.reshape(M).astype(jnp.float32), (0, M_pad - M)).reshape(Mp_pad, P)

    # Row tile: large for DMA/store efficiency, capped so the grid has >= 2 steps when
    # possible (v7x megacore), and shrunk if the *lane-padded* VMEM footprint would
    # approach the 32 MiB scoped limit.
    out_isz = jnp.dtype(out_dtype).itemsize

    def _tile_bytes(r, c, isz):
        return _round_up(max(r, 1), 8) * _round_up(max(c, 1), 128) * isz

    tm = min(max(8, _round_up(block_rows, 8)),
             _round_up(-(-Mp_pad // 2), 8))

    def _footprint(t):
        return (2 * (2 * _tile_bytes(t, P, 4) + _tile_bytes(t, lanes, out_isz))  # x, y, out (dbl-buf)
                + 2 * (_tile_bytes(K, lanes, 4) + _tile_bytes(1, lanes, 4))       # resident w, b
                + _tile_bytes(t, 2 * P, 4)                                        # z scratch
                + 8 * _tile_bytes(t, lanes, 4))                                   # dot/sin temporaries

    while tm > 8 and _footprint(tm) > 30 * 1024 * 1024:
        tm = max(8, _round_up(tm // 2, 8))

    grid = (pl.cdiv(Mp_pad, tm),)

    flops = 2 * Mp_pad * K * lanes + (30 if use_fast_sin else 0) * Mp_pad * lanes
    cost = pl.CostEstimate(
        flops=int(flops),
        transcendentals=0 if use_fast_sin else int(Mp_pad * lanes),
        bytes_accessed=int(2 * Mp_pad * P * 4 + (K + 1) * lanes * 4
                           + Mp_pad * lanes * out_isz),
    )

    kernel = functools.partial(_fourier_kernel, use_fast_sin=use_fast_sin)
    out_packed = pl.pallas_call(
        kernel,
        out_shape=jax.ShapeDtypeStruct((Mp_pad, lanes), out_dtype),
        grid_spec=pltpu.PrefetchScalarGridSpec(
            num_scalar_prefetch=0,
            grid=grid,
            in_specs=[
                pl.BlockSpec((tm, P), lambda i: (i, 0)),       # packed x (streamed, contiguous)
                pl.BlockSpec((tm, P), lambda i: (i, 0)),       # packed y (streamed, contiguous)
                pl.BlockSpec((K, lanes), lambda i: (0, 0)),    # folded weights (resident)
                pl.BlockSpec((1, lanes), lambda i: (0, 0)),    # folded bias row (resident)
            ],
            out_specs=pl.BlockSpec((tm, lanes), lambda i: (i, 0)),
            scratch_shapes=[pltpu.VMEM((tm, 2 * P), jnp.float32)],
        ),
        compiler_params=pltpu.CompilerParams(
            dimension_semantics=("parallel",),     # megacore sharding on v7x
            vmem_limit_bytes=32 * 1024 * 1024,     # safe on v5e/v6e/v7x; tm sized to fit above
        ),
        cost_estimate=cost,
    )(x_p, y_p, w_full, b_row)

    # Unpack lanes: lane p*F+f of packed row r is feature f of coordinate r*P+p.
    out = out_packed.reshape(M_pad, F)[:M]          # no-op when M % (8*P) == 0
    return out.reshape(B, N, F)


def fourier_embedding_ref(y, x, weight, bias, height, width):
    x_norm = 2.0 * x / (width - 1.0) - 1.0
    y_norm = 2.0 * y / (height - 1.0) - 1.0
    z = jnp.concatenate((x_norm[..., None], y_norm[..., None]), axis=2)   # (B, N, 2)
    return jnp.sin(jnp.einsum("bnk,fk->bnf", z, weight) + bias)


if __name__ == "__main__":
    features = 32
    height, width = 16, 16

    key = jax.random.PRNGKey(0)
    k1, k2, k3, k4 = jax.random.split(key, 4)

    # nn.Linear(2, features): weight (features, 2), bias (features,)
    bound = 1.0 / jnp.sqrt(2.0)
    weight = jax.random.uniform(k3, (features, 2), jnp.float32, -bound, bound)
    bias = jax.random.uniform(k4, (features,), jnp.float32, -bound, bound)

    # Primary check: small module-like shapes (batch=2, seq=8).
    B, N = 2, 8
    x = jax.random.uniform(k1, (B, N), jnp.float32, 0.0, width - 1.0)
    y = jax.random.uniform(k2, (B, N), jnp.float32, 0.0, height - 1.0)
    out = jax.block_until_ready(fourier_embedding(y, x, weight, bias, height, width))
    ref = fourier_embedding_ref(y, x, weight, bias, height, width)
    assert out.shape == (B, N, features)
    assert jnp.allclose(out, ref, atol=2e-5, rtol=2e-5), "mismatch vs reference (small)"

    # Secondary check: exercises a multi-step grid and the ragged last block.
    B2, N2 = 2, 1100
    x2 = jax.random.uniform(k1, (B2, N2), jnp.float32, 0.0, width - 1.0)
    y2 = jax.random.uniform(k2, (B2, N2), jnp.float32, 0.0, height - 1.0)
    out2 = jax.block_until_ready(fourier_embedding(y2, x2, weight, bias, height, width))
    ref2 = fourier_embedding_ref(y2, x2, weight, bias, height, width)
    assert out2.shape == (B2, N2, features)
    assert jnp.allclose(out2, ref2, atol=2e-5, rtol=2e-5), "mismatch vs reference (ragged)"

    print("KERNEL_OK")
</pallas_src>

<mosaic_0001>
module attributes {stable_mosaic.version = 11 : i64} {
  func.func @_fourier_kernel(%arg0: i32, %arg1: memref<8x8xf32, #tpu.memory_space<vmem>>, %arg2: memref<8x8xf32, #tpu.memory_space<vmem>>, %arg3: memref<16x256xf32, #tpu.memory_space<vmem>>, %arg4: memref<1x256xf32, #tpu.memory_space<vmem>>, %arg5: memref<8x256xf32, #tpu.memory_space<vmem>>, %arg6: memref<8x16xf32, #tpu.memory_space<vmem>>) attributes {dimension_semantics = [#tpu.dimension_semantics<parallel>], iteration_bounds = array<i64: 1>, scalar_prefetch = 0 : i64, scratch_operands = 1 : i64, tpu.core_type = #tpu.core_type<tc>, window_params = [{transform_indices = @transform_0, window_bounds = array<i64: 8, 8>}, {transform_indices = @transform_1, window_bounds = array<i64: 8, 8>}, {pipeline_mode = #tpu.pipeline_mode<synchronous>, transform_indices = @transform_2, window_bounds = array<i64: 16, 256>}, {pipeline_mode = #tpu.pipeline_mode<synchronous>, transform_indices = @transform_3, window_bounds = array<i64: 1, 256>}, {transform_indices = @transform_4, window_bounds = array<i64: 8, 256>}]} {
    %c0 = arith.constant 0 : index
    %c0_0 = arith.constant 0 : index
    %0 = vector.load %arg1[%c0, %c0_0] : memref<8x8xf32, #tpu.memory_space<vmem>>, vector<8x8xf32>
    %c0_1 = arith.constant 0 : index
    %c0_2 = arith.constant 0 : index
    %1 = vector.load %arg6[%c0_1, %c0_2] : memref<8x16xf32, #tpu.memory_space<vmem>>, vector<8x8xf32>
    tpu.vector_store %arg6[%c0_1, %c0_2], %0 {strides = array<i32>} : memref<8x16xf32, #tpu.memory_space<vmem>>, vector<8x8xf32>,
    %c0_3 = arith.constant 0 : index
    %c0_4 = arith.constant 0 : index
    %2 = vector.load %arg2[%c0_3, %c0_4] : memref<8x8xf32, #tpu.memory_space<vmem>>, vector<8x8xf32>
    %c0_5 = arith.constant 0 : index
    %c8 = arith.constant 8 : index
    %3 = vector.load %arg6[%c0_5, %c8] : memref<8x16xf32, #tpu.memory_space<vmem>>, vector<8x8xf32>
    tpu.vector_store %arg6[%c0_5, %c8], %2 {strides = array<i32>} : memref<8x16xf32, #tpu.memory_space<vmem>>, vector<8x8xf32>,
    %c0_6 = arith.constant 0 : index
    %c0_7 = arith.constant 0 : index
    %4 = vector.load %arg6[%c0_6, %c0_7] : memref<8x16xf32, #tpu.memory_space<vmem>>, vector<8x16xf32>
    %c0_8 = arith.constant 0 : index
    %c0_9 = arith.constant 0 : index
    %5 = vector.load %arg3[%c0_8, %c0_9] : memref<16x256xf32, #tpu.memory_space<vmem>>, vector<16x256xf32>
    %cst = arith.constant dense<0.000000e+00> : vector<8x256xf32>
    %6 = tpu.matmul %4, %5, %cst {dimension_numbers = #tpu.dot_dimension_numbers<[1], [0], [0], [1], [0, 0, 1, 1], [], []>} : vector<8x16xf32>, vector<16x256xf32>, vector<8x256xf32> -> vector<8x256xf32>
    %c0_10 = arith.constant 0 : index
    %c0_11 = arith.constant 0 : index
    %7 = vector.load %arg4[%c0_10, %c0_11] : memref<1x256xf32, #tpu.memory_space<vmem>>, vector<1x256xf32>
    %8 = vector.broadcast %7 : vector<1x256xf32> to vector<8x256xf32>
    %9 = arith.addf %6, %8 : vector<8x256xf32>
    %cst_12 = arith.constant 0.318309873 : f32
    %10 = vector.broadcast %cst_12 : f32 to vector<8x256xf32>
    %11 = arith.mulf %9, %10 : vector<8x256xf32>
    %12 = math.roundeven %11 : vector<8x256xf32>
    %cst_13 = arith.constant 3.140625 : f32
    %13 = vector.broadcast %cst_13 : f32 to vector<8x256xf32>
    %14 = arith.mulf %12, %13 : vector<8x256xf32>
    %15 = arith.subf %9, %14 : vector<8x256xf32>
    %cst_14 = arith.constant 9.67653584E-4 : f32
    %16 = vector.broadcast %cst_14 : f32 to vector<8x256xf32>
    %17 = arith.mulf %12, %16 : vector<8x256xf32>
    %18 = arith.subf %15, %17 : vector<8x256xf32>
    %cst_15 = arith.constant 5.000000e-01 : f32
    %19 = vector.broadcast %cst_15 : f32 to vector<8x256xf32>
    %20 = arith.mulf %19, %12 : vector<8x256xf32>
    %21 = math.floor %20 : vector<8x256xf32>
    %cst_16 = arith.constant 2.000000e+00 : f32
    %22 = vector.broadcast %cst_16 : f32 to vector<8x256xf32>
    %23 = arith.mulf %22, %21 : vector<8x256xf32>
    %24 = arith.subf %12, %23 : vector<8x256xf32>
    %cst_17 = arith.constant 2.000000e+00 : f32
    %25 = vector.broadcast %cst_17 : f32 to vector<8x256xf32>
    %26 = arith.mulf %25, %24 : vector<8x256xf32>
    %cst_18 = arith.constant 1.000000e+00 : f32
    %27 = vector.broadcast %cst_18 : f32 to vector<8x256xf32>
    %28 = arith.subf %27, %26 : vector<8x256xf32>
    %29 = arith.mulf %18, %18 : vector<8x256xf32>
    %cst_19 = arith.constant 1.60590444E-10 : f32
    %30 = vector.broadcast %cst_19 : f32 to vector<8x256xf32>
    %31 = arith.mulf %30, %29 : vector<8x256xf32>
    %cst_20 = arith.constant 2.50521079E-8 : f32
    %32 = vector.broadcast %cst_20 : f32 to vector<8x256xf32>
    %33 = arith.subf %31, %32 : vector<8x256xf32>
    %34 = arith.mulf %33, %29 : vector<8x256xf32>
    %cst_21 = arith.constant 2.75573188E-6 : f32
    %35 = vector.broadcast %cst_21 : f32 to vector<8x256xf32>
    %36 = arith.addf %34, %35 : vector<8x256xf32>
    %37 = arith.mulf %36, %29 : vector<8x256xf32>
    %cst_22 = arith.constant 1.98412701E-4 : f32
    %38 = vector.broadcast %cst_22 : f32 to vector<8x256xf32>
    %39 = arith.subf %37, %38 : vector<8x256xf32>
    %40 = arith.mulf %39, %29 : vector<8x256xf32>
    %cst_23 = arith.constant 0.00833333377 : f32
    %41 = vector.broadcast %cst_23 : f32 to vector<8x256xf32>
    %42 = arith.addf %40, %41 : vector<8x256xf32>
    %43 = arith.mulf %42, %29 : vector<8x256xf32>
    %cst_24 = arith.constant 0.166666672 : f32
    %44 = vector.broadcast %cst_24 : f32 to vector<8x256xf32>
    %45 = arith.subf %43, %44 : vector<8x256xf32>
    %46 = arith.mulf %45, %29 : vector<8x256xf32>
    %cst_25 = arith.constant 1.000000e+00 : f32
    %47 = vector.broadcast %cst_25 : f32 to vector<8x256xf32>
    %48 = arith.addf %46, %47 : vector<8x256xf32>
    %49 = arith.mulf %18, %48 : vector<8x256xf32>
    %50 = arith.mulf %28, %49 : vector<8x256xf32>
    %c0_26 = arith.constant 0 : index
    %c0_27 = arith.constant 0 : index
    %51 = vector.load %arg5[%c0_26, %c0_27] : memref<8x256xf32, #tpu.memory_space<vmem>>, vector<8x256xf32>
    tpu.vector_store %arg5[%c0_26, %c0_27], %50 {strides = array<i32>} : memref<8x256xf32, #tpu.memory_space<vmem>>, vector<8x256xf32>,
    return
  }
  func.func @transform_0(%arg0: i32) -> (i32, i32) {
    %c0_i32 = arith.constant 0 : i32
    %c0_i32_0 = arith.constant 0 : i32
    return %arg0, %c0_i32 : i32, i32
  }
  func.func @transform_1(%arg0: i32) -> (i32, i32) {
    %c0_i32 = arith.constant 0 : i32
    %c0_i32_0 = arith.constant 0 : i32
    return %arg0, %c0_i32 : i32, i32
  }
  func.func @transform_2(%arg0: i32) -> (i32, i32) {
    %c0_i32 = arith.constant 0 : i32
    %c0_i32_0 = arith.constant 0 : i32
    %c0_i32_1 = arith.constant 0 : i32
    return %c0_i32, %c0_i32_0 : i32, i32
  }
  func.func @transform_3(%arg0: i32) -> (i32, i32) {
    %c0_i32 = arith.constant 0 : i32
    %c0_i32_0 = arith.constant 0 : i32
    %c0_i32_1 = arith.constant 0 : i32
    return %c0_i32, %c0_i32_0 : i32, i32
  }
  func.func @transform_4(%arg0: i32) -> (i32, i32) {
    %c0_i32 = arith.constant 0 : i32
    %c0_i32_0 = arith.constant 0 : i32
    return %arg0, %c0_i32 : i32, i32
  }
}

</mosaic_0001>

<bundles_post_ra>
// kernel: tpu_custom_call.1
= control target key start
LH: loop header
LB: loop body
LE: loop exit
PB: predicated region body
PF: predicated region fallthrough
CT: control target
= control target key end

     0   :  { %9 = vsyncpa [#allocation4], 0  ;;  %s428_s0 = inlined_call_operand.hbm [shape: f32[8,8], index: 0, kind: input, shape index: {}]   ;;  %s429_s1 = inlined_call_operand.hbm [shape: f32[8,8], index: 1, kind: input, shape index: {}]   ;;  %s430_s2 = inlined_call_operand.hbm [shape: f32[16,256], index: 2, kind: input, shape index: {}]   ;;  %s431_s3 = inlined_call_operand.vmem [shape: f32[1,256], index: 3, kind: input, shape index: {}]   ;;  %s432_s4 = inlined_call_operand.hbm [shape: f32[8,256], index: 4, kind: output, shape index: {}]  }
   0x1   :  { %10 = vsyncpa [#allocation7], 0 }
   0x2   :  { %11 = vsyncpa [#allocation5], 0  ;;  %s344_s15 = smov [#allocation6]   ;;  %s345_s17 = smov [#allocation3]  }
   0x3   :  { %s28_s16 = sshll.u32 %s344_s15, 4  ;;  %s18_s18 = sshll.u32 %s345_s17, 4  ;;  %s29_s16 = int_to_ptr.vmem [resolvable:$true] %s28_s16  ;;  %s19_s18 = int_to_ptr.vmem [resolvable:$true] %s18_s18 }
   0x4   :  { %s250_s21 = scalar_lea.hbm %s429_s1, 128 }
   0x5   :  { %p251_p0 = scmp.ne.s32.totalorder %s429_s1, %s250_s21  ;;  %p254_p1 = scmp.lt.u32.totalorder %s250_s21, %s429_s1 }
   0x7   :  { %p256_p2 = pnand %p254_p1, %p251_p0 }
   0x9   :  { %259 = shalt.err (!%p256_p2)
}
   0xa   :  { %s260_s26 = scalar_lea.vmem %s29_s16, 128  ;;  %p265_p4 = scmp.lt.s32.totalorder %s29_s16, %s29_s16 }
   0xb   :  { %p261_p3 = scmp.ne.s32.totalorder %s29_s16, %s260_s26  ;;  %p266_p5 = scmp.lt.s32.totalorder %s260_s26, %s260_s26 }
   0xd   :  { %p267_p6 = por %p266_p5, %p265_p4 }
   0xf   :  { %p268_p7 = pnand %p267_p6, %p261_p3 }
  0x11   :  { %271 = shalt.err (!%p268_p7)
}
  0x12   :  { %31 = dma.hbm_to_vmem [thread:$0]  %s429_s1, 128, %s29_s16, [#allocation7]  }
  0x13   :  { %s272_s5 = scalar_lea.hbm %s428_s0, 128 }
  0x14   :  { %p273_p8 = scmp.ne.s32.totalorder %s428_s0, %s272_s5  ;;  %p276_p9 = scmp.lt.u32.totalorder %s272_s5, %s428_s0 }
  0x16   :  { %p278_p10 = pnand %p276_p9, %p273_p8 }
  0x18   :  { %281 = shalt.err (!%p278_p10)
}
  0x19   :  { %s282_s10 = scalar_lea.vmem %s19_s18, 128  ;;  %p287_p12 = scmp.lt.s32.totalorder %s19_s18, %s19_s18 }
  0x1a   :  { %p283_p11 = scmp.ne.s32.totalorder %s19_s18, %s282_s10  ;;  %p288_p13 = scmp.lt.s32.totalorder %s282_s10, %s282_s10 }
  0x1c   :  { %p289_p0 = por %p288_p13, %p287_p12 }
  0x1e   :  { %p290_p1 = pnand %p289_p0, %p283_p11 }
  0x20   :  { %293 = shalt.err (!%p290_p1)
}
  0x21   :  { %21 = dma.hbm_to_vmem [thread:$0]  %s428_s0, 128, %s19_s18, [#allocation4]  }
  0x22   :  { %s346_s12 = smov [#allocation8]   ;;  %s294_s16 = scalar_lea.hbm %s430_s2, 512 }
  0x23   :  { %s37_s13 = sshll.u32 %s346_s12, 4  ;;  %p295_p2 = scmp.ne.s32.totalorder %s430_s2, %s294_s16  ;;  %s38_s13 = int_to_ptr.vmem [resolvable:$true] %s37_s13 }
  0x24   :  { %p298_p3 = scmp.lt.u32.totalorder %s294_s16, %s430_s2 }
  0x26   :  { %p300_p4 = pnand %p298_p3, %p295_p2 }
  0x28   :  { %303 = shalt.err (!%p300_p4)
}
  0x29   :  { %s304_s22 = scalar_lea.vmem %s38_s13, 512  ;;  %p309_p6 = scmp.lt.s32.totalorder %s38_s13, %s38_s13 }
  0x2a   :  { %p305_p5 = scmp.ne.s32.totalorder %s38_s13, %s304_s22  ;;  %p310_p7 = scmp.lt.s32.totalorder %s304_s22, %s304_s22 }
  0x2c   :  { %p311_p8 = por %p310_p7, %p309_p6 }
  0x2e   :  { %p312_p9 = pnand %p311_p8, %p305_p5 }
  0x30   :  { %315 = shalt.err (!%p312_p9)
}
  0x31   :  { %s347_s0 = smov 256   ;;  %s348_s18 = smov 16  }
  0x32   :  { %43 = dma.hbm_to_vmem [thread:$0]  %s430_s2, 512, %s38_s13, [#allocation7], %s347_s0, %s347_s0, %s348_s18  }
  0x33   :  { %338 = dma.done.wait [#allocation4], 128  }
  0x34   :  { %339 = vsyncadd [#allocation4], 4294967168 }
  0x35   :  { %340 = dma.done.wait [#allocation7], 640  }
  0x36   :  { %341 = vsyncadd [#allocation7], 4294966656  ;;  %v349_v0 = vmov 0.0   ;;  %vm56_vm0 = vcmask 64512   ;;  %v58_v1 = vld [vmem:[#allocation6] sm:$0xff]  ;;  %v55_v2 = vld [vmem:[#allocation3] sm:$0xff]  ;;  %v72_v11 = vlaneseq }
  0x37   :  { %150 = vmatprep.mubr.f32.mxu0 %v349_v0  ;;  %v67_v3 = vld [vmem:[#allocation8 + $0x8] sm:$0xff]  ;;  %s350_s25 = smov 8   ;;  %57 = vst.msk [vmem:[#allocation2] sm:$0xff] %vm56_vm0, %v55_v2  ;;  %v69_v4 = vld [vmem:[#allocation8 + $0x18] sm:$0xff]  ;;  %v66_v5 = vld [vmem:[#allocation8] sm:$0xff]  ;;  %vm63_vm1 = vcmask 130112  }
  0x38   :  { %60 = vrot.lane.b32.xlu0 %v58_v1, %s350_s25  ;;  %v68_v6 = vld [vmem:[#allocation8 + $0x10] sm:$0xff]  ;;  %v236_v7 = vpack.c.bf16 %v69_v4, %v67_v3  ;;  %vm82_vm2 = vcmask 130048   ;;  %v73_v12 = vshrl.u32 %v72_v11, 7  ;;  %v70_v14 = vld [vmem:[%s431_s3] sm:$0x3]  ;;  %s351_s3 = smov [#allocation9]  }
  0x39   :  { %v238_v8 = vpack.c.bf16 %v68_v6, %v66_v5  ;;  %s219_s27 = sshll.u32 %s351_s3, 4  ;;  %s220_s27 = int_to_ptr.vmem [resolvable:$true] %s219_s27 }
  0x3a   :  { %237 = vmatprep.subr.bf16.mxu0 %v236_v7  ;;  %v74_v13 = vsub.s32 0, %v73_v12  ;;  %v78_v15 = vsub.s32 1, %v73_v12  ;;  %s316_s28 = scalar_lea.vmem %s220_s27, 256  ;;  %p321_p11 = scmp.lt.s32.totalorder %s220_s27, %s220_s27 }
  0x3b   :  { %239 = vmatpush1.bf16.msra.mxu0 %v238_v8  ;;  %p317_p10 = scmp.ne.s32.totalorder %s220_s27, %s316_s28  ;;  %p322_p12 = scmp.lt.s32.totalorder %s316_s28, %s316_s28 }
  0x3c   :  { %v75_v16 = vrot.slane %v70_v14, %v74_v13  ;;  %v79_v17 = vrot.slane %v70_v14, %v78_v15 }
  0x3d   :  { %p323_p13 = por %p322_p12, %p321_p11 }
  0x3f   :  { %p324_p0 = pnand %p323_p13, %p317_p10 }
  0xaa   :  { %v61_v9 = vpop.permute.xlu0 %60 }
  0xab   :  { %64 = vst.msk [vmem:[#allocation2] sm:$0xff] %vm63_vm1, %v61_v9 }
  0xb2   :  { %v65_v10 = vld [vmem:[#allocation2] sm:$0xff] }
  0xb3   :  { %229 = vmatmul.mubr.msk.f32.vlgmr.msra.gmra.mrb[0].mxu0 %vm82_vm2, %v65_v10 }
 0x186   :  { %v152_v18 = vpop.f32.mrb[0].mxu0 }
 0x187   :  { %v153_v19 = vadd.f32 %v152_v18, %v75_v16  ;;  %v154_v20 = vpop.f32.mrb[1].mxu0 }
 0x188   :  { %v155_v21 = vadd.f32 %v154_v20, %v79_v17 }
 0x189   :  { %v157_v22 = vmul.f32 0.31830987, %v153_v19 }
 0x18a   :  { %v158_v23 = vmul.f32 0.31830987, %v155_v21 }
 0x18b   :  { %v240_v24 = vround.rtne.f32 %v157_v22 }
 0x18c   :  { %v241_v25 = vround.rtne.f32 %v158_v23 }
 0x18d   :  { %v161_v26 = vmul.f32 3.140625, %v240_v24  ;;  %v165_v29 = vmul.f32 0.0009676536, %v240_v24  ;;  %v169_v40 = vmul.f32 0.5, %v240_v24 }
 0x18e   :  { %v162_v27 = vmul.f32 3.140625, %v241_v25  ;;  %v166_v31 = vmul.f32 0.0009676536, %v241_v25  ;;  %v170_v42 = vmul.f32 0.5, %v241_v25 }
 0x18f   :  { %v163_v28 = vsub.f32 %v153_v19, %v161_v26  ;;  %v171_v47 = vfloor.f32 %v169_v40 }
 0x190   :  { %v164_v30 = vsub.f32 %v155_v21, %v162_v27  ;;  %v172_v49 = vfloor.f32 %v170_v42 }
 0x191   :  { %v167_v32 = vsub.f32 %v163_v28, %v165_v29  ;;  %v173_v53 = vmul.f32 2.0, %v171_v47 }
 0x192   :  { %v168_v33 = vsub.f32 %v164_v30, %v166_v31  ;;  %v174_v55 = vmul.f32 2.0, %v172_v49 }
 0x193   :  { %v181_v34 = vmul.f32 %v167_v32, %v167_v32  ;;  %v175_v59 = vsub.f32 %v240_v24, %v173_v53 }
 0x194   :  { %v182_v35 = vmul.f32 %v168_v33, %v168_v33  ;;  %v176_v61 = vsub.f32 %v241_v25, %v174_v55 }
 0x195   :  { %v183_v36 = vmul.f32 1.6059044e-10, %v181_v34  ;;  %v177_v1 = vmul.f32 2.0, %v175_v59 }
 0x196   :  { %v184_v37 = vmul.f32 1.6059044e-10, %v182_v35  ;;  %v178_v3 = vmul.f32 2.0, %v176_v61 }
 0x197   :  { %v230_v38 = vadd.f32 -2.5052108e-08, %v183_v36  ;;  %v179_v7 = vsub.f32 1.0, %v177_v1 }
 0x198   :  { %v231_v39 = vadd.f32 -2.5052108e-08, %v184_v37  ;;  %v180_v9 = vsub.f32 1.0, %v178_v3 }
 0x199   :  { %v187_v41 = vmul.f32 %v230_v38, %v181_v34 }
 0x19a   :  { %v188_v43 = vmul.f32 %v231_v39, %v182_v35 }
 0x19b   :  { %v189_v44 = vadd.f32 2.7557319e-06, %v187_v41 }
 0x19c   :  { %v190_v45 = vadd.f32 2.7557319e-06, %v188_v43 }
 0x19d   :  { %v191_v46 = vmul.f32 %v189_v44, %v181_v34 }
 0x19e   :  { %v192_v48 = vmul.f32 %v190_v45, %v182_v35 }
 0x19f   :  { %v232_v50 = vadd.f32 -0.0001984127, %v191_v46 }
 0x1a0   :  { %v233_v51 = vadd.f32 -0.0001984127, %v192_v48 }
 0x1a1   :  { %v195_v52 = vmul.f32 %v232_v50, %v181_v34 }
 0x1a2   :  { %v196_v54 = vmul.f32 %v233_v51, %v182_v35 }
 0x1a3   :  { %v197_v56 = vadd.f32 0.008333334, %v195_v52 }
 0x1a4   :  { %v198_v57 = vadd.f32 0.008333334, %v196_v54 }
 0x1a5   :  { %v199_v58 = vmul.f32 %v197_v56, %v181_v34 }
 0x1a6   :  { %v200_v60 = vmul.f32 %v198_v57, %v182_v35 }
 0x1a7   :  { %v234_v62 = vadd.f32 -0.16666667, %v199_v58 }
 0x1a8   :  { %v235_v63 = vadd.f32 -0.16666667, %v200_v60 }
 0x1a9   :  { %v203_v0 = vmul.f32 %v234_v62, %v181_v34 }
 0x1aa   :  { %v204_v2 = vmul.f32 %v235_v63, %v182_v35 }
 0x1ab   :  { %v205_v4 = vadd.f32 1.0, %v203_v0 }
 0x1ac   :  { %v206_v5 = vadd.f32 1.0, %v204_v2 }
 0x1ad   :  { %v207_v6 = vmul.f32 %v205_v4, %v167_v32 }
 0x1ae   :  { %v208_v8 = vmul.f32 %v206_v5, %v168_v33 }
 0x1af   :  { %v209_v10 = vmul.f32 %v207_v6, %v179_v7 }
 0x1b0   :  { %v210_v11 = vmul.f32 %v208_v8, %v180_v9 }
 0x1b1   :  { %211 = vst [vmem:[#allocation9] sm:$0xff] %v209_v10 }
 0x1b2   :  { %212 = vst [vmem:[#allocation9 + $0x8] sm:$0xff] %v210_v11 }
 0x1b3   :  { %327 = shalt.err (!%p324_p0)
}
 0x1b4   :  { %s328_s5 = scalar_lea.hbm %s432_s4, 256 }
 0x1b5   :  { %p329_p1 = scmp.ne.s32.totalorder %s432_s4, %s328_s5  ;;  %p332_p2 = scmp.lt.u32.totalorder %s328_s5, %s432_s4 }
 0x1b7   :  { %p334_p3 = pnand %p332_p2, %p329_p1 }
 0x1b9   :  { %337 = shalt.err (!%p334_p3)
}
 0x1ba   :  { %222 = dma.vmem_to_hbm [thread:$0]  %s220_s27, 256, %s432_s4, [#allocation5]  }
 0x1bb   :  { %342 = dma.done.wait [#allocation5], 256  }
 0x1bc   :  { %343 = vsyncadd [#allocation5], 4294967040 }
 0x1bd   :  { %226 = vsyncpa [#allocation4], 1 }
 0x1be   :  { %227 = vsyncpa [#allocation7], 1 }
 0x1bf   :  { %228 = vsyncpa [#allocation5], 1 }

</bundles_post_ra>
